<compile_context>
chip_gen: v6e
topology: v6e:2x2x1
jax: 0.10.0
libtpu: 0.0.40
codegen_flags: <defaults>
</compile_context>

<pallas_src>
import functools
import math

import jax
import jax.numpy as jnp
from jax.experimental import pallas as pl
from jax.experimental.pallas import tpu as pltpu


_MIN_GRID_BLOCKS = 8      # keep ~>=4 blocks per TensorCore (v7x has 2 TCs)
_DMA_RING = 4             # outstanding HBM->HBM DMAs in the major-pair path


# --------------------------------------------------------------------------
# Hardware-aware sizing helpers
# --------------------------------------------------------------------------
def _hw_config():
    """Return (vmem_limit_bytes, per-block byte budget), generation aware."""
    vmem_phys = 64 * 1024 * 1024
    try:
        info = pltpu.get_tpu_info()
        vmem_phys = int(getattr(info, "vmem_capacity_bytes", vmem_phys))
    except Exception:
        pass
    if vmem_phys >= 128 * 1024 * 1024:            # v5e / v6e: 128 MiB physical
        return 64 * 1024 * 1024, 8 * 1024 * 1024
    return 48 * 1024 * 1024, 6 * 1024 * 1024      # v7x: 64 MiB physical


def _sublane_gran(dtype):
    # 8 for 32-bit, 16 for bf16/fp16, 32 for int8/fp8 (packed sublanes).
    return 8 * max(1, 4 // jnp.dtype(dtype).itemsize)


def _pick_tile(dim, gran, cap):
    """Tile for a dim that must be a multiple of `gran` or the full dim.

    Full dim if it fits under `cap`; otherwise the largest exact divisor that
    is a multiple of `gran` and not much smaller than `cap`; otherwise a
    near-cap multiple of `gran` (grid then uses pl.cdiv + padded edge block).
    """
    if dim <= cap:
        return dim
    base = max(gran, (cap // gran) * gran)
    best = None
    for cand in range(base, gran - 1, -gran):
        if dim % cand == 0:
            best = cand
            break
    if best is not None and best * 2 >= base:
        return best                      # near-cap exact divisor, no padding
    return base                          # padded edge block via cdiv grid


def _cost(x):
    return pl.CostEstimate(
        flops=0, transcendentals=0,
        bytes_accessed=2 * x.size * x.dtype.itemsize)


# --------------------------------------------------------------------------
# Kernels
# --------------------------------------------------------------------------
def _transpose_kernel(x_ref, o_ref, *, ax0, ax1):
    o_ref[...] = jnp.swapaxes(x_ref[...], ax0, ax1)


def _hbm_swap_dma_kernel(x_hbm, o_hbm, sem, *, ax0, ax1, nd, total):
    """Pure HBM->HBM relayout: one strided DMA per (i, j) slab, ring of
    _DMA_RING outstanding copies. Grid must run sequentially ("arbitrary")."""
    j = pl.program_id(0)                 # index along x's ax1 (out's ax0)
    i = pl.program_id(1)                 # index along x's ax0 (out's ax1), fast
    step = j * pl.num_programs(1) + i
    slot = step % _DMA_RING

    def descr(sem_ref):
        src_idx = [slice(None)] * nd
        dst_idx = [slice(None)] * nd
        src_idx[ax0], src_idx[ax1] = i, j
        dst_idx[ax0], dst_idx[ax1] = j, i
        return pltpu.make_async_copy(
            x_hbm.at[tuple(src_idx)], o_hbm.at[tuple(dst_idx)], sem_ref)

    # Retire the DMA issued _DMA_RING steps ago before reusing its slot.
    @pl.when(step >= _DMA_RING)
    def _():
        descr(sem.at[slot]).wait()

    descr(sem.at[slot]).start()

    # Drain every still-outstanding DMA on the final grid step.
    @pl.when(step == total - 1)
    def _():
        for s in range(max(0, total - _DMA_RING), total):
            descr(sem.at[s % _DMA_RING]).wait()


# --------------------------------------------------------------------------
# Path A: both swapped axes are major -> direct HBM->HBM DMA relayout.
# --------------------------------------------------------------------------
def _swap_major_pair(x, out_shape, ax0, ax1, vmem_limit):
    nd = x.ndim
    # Fast (innermost) grid axis advances the output's ax1 index -> write-side
    # locality; the "arbitrary" semantics are required for the DMA ring.
    grid = (x.shape[ax1], x.shape[ax0])
    total = grid[0] * grid[1]
    kernel = functools.partial(
        _hbm_swap_dma_kernel, ax0=ax0, ax1=ax1, nd=nd, total=total)
    return pl.pallas_call(
        kernel,
        out_shape=jax.ShapeDtypeStruct(out_shape, x.dtype),
        grid=grid,
        in_specs=[pl.BlockSpec(memory_space=pl.ANY)],
        out_specs=pl.BlockSpec(memory_space=pl.ANY),
        scratch_shapes=[pltpu.SemaphoreType.DMA((_DMA_RING,))],
        compiler_params=pltpu.CompilerParams(
            dimension_semantics=("arbitrary", "arbitrary"),
            vmem_limit_bytes=vmem_limit),
        cost_estimate=_cost(x),
    )(x)


# --------------------------------------------------------------------------
# Path B1: swapping the last two dims -> tiled in-kernel transpose.
# --------------------------------------------------------------------------
def _swap_minor_pair(x, out_shape, budget, vmem_limit):
    nd = x.ndim
    itemsize = x.dtype.itemsize
    H, W = x.shape[-2], x.shape[-1]

    # Square-ish tile cap derived from the budget (th*tw*itemsize <= budget).
    tile_cap = max(128, (math.isqrt(max(1, budget // itemsize)) // 128) * 128)
    th = _pick_tile(H, 128, tile_cap)
    tw = _pick_tile(W, 128, tile_cap)
    n_h = pl.cdiv(H, th)
    n_w = pl.cdiv(W, tw)
    tiles_hw = n_h * n_w
    block_bytes = th * tw * itemsize

    # Greedily fold innermost leading axes into the block to amortize the
    # per-grid-step overhead, while staying under the budget and keeping at
    # least _MIN_GRID_BLOCKS blocks so the pipeline (and both v7x cores) stay
    # busy.
    grid_lead = list(x.shape[:nd - 2])
    fold_dims = []
    while grid_lead:
        d = grid_lead[-1]
        if block_bytes * d > budget:
            break
        if math.prod(grid_lead[:-1]) * tiles_hw < _MIN_GRID_BLOCKS:
            break
        fold_dims.insert(0, d)
        block_bytes *= d
        grid_lead.pop()

    n_lead = len(grid_lead)
    n_fold = len(fold_dims)

    # Innermost grid axis advances the OUTPUT's lane dim (blocks of th along
    # out[-1]) so consecutive steps write adjacent lane-direction HBM segments.
    grid = tuple(grid_lead) + (n_w, n_h)
    in_block = (1,) * n_lead + tuple(fold_dims) + (th, tw)
    out_block = (1,) * n_lead + tuple(fold_dims) + (tw, th)

    def in_map(*idx):
        lead = idx[:n_lead]
        jw, ih = idx[n_lead], idx[n_lead + 1]
        return lead + (0,) * n_fold + (ih, jw)

    def out_map(*idx):
        lead = idx[:n_lead]
        jw, ih = idx[n_lead], idx[n_lead + 1]
        return lead + (0,) * n_fold + (jw, ih)

    # TODO(synk): on v7x the sub-32-bit minor transpose can go XLU-bound;
    # a bitcast-pack (2xbf16 -> u32) + 32-bit transpose + roll fix-up would
    # halve the vxpose count but is not implemented here.
    kernel = functools.partial(_transpose_kernel, ax0=-2, ax1=-1)
    return pl.pallas_call(
        kernel,
        out_shape=jax.ShapeDtypeStruct(out_shape, x.dtype),
        grid=grid,
        in_specs=[pl.BlockSpec(in_block, in_map)],
        out_specs=pl.BlockSpec(out_block, out_map),
        compiler_params=pltpu.CompilerParams(
            dimension_semantics=("parallel",) * len(grid),
            vmem_limit_bytes=vmem_limit),
        cost_estimate=_cost(x),
    )(x)


# --------------------------------------------------------------------------
# Path B2: one major + one minor axis -> in-kernel swap, ax0 tiled.
# --------------------------------------------------------------------------
def _swap_mixed_pair(x, out_shape, ax0, ax1, budget, vmem_limit):
    nd = x.ndim
    itemsize = x.dtype.itemsize
    sub_gran = _sublane_gran(x.dtype)

    other_minor = nd - 2 if ax1 == nd - 1 else nd - 1      # minor axis NOT swapped
    gran_other = 128 if other_minor == nd - 1 else sub_gran
    # After the swap, ax0's tile becomes the output's ax1 (minor) extent.
    gran_ax0 = 128 if ax1 == nd - 1 else sub_gran
    full_ax1 = x.shape[ax1]

    t0 = x.shape[ax0]
    t_other = x.shape[other_minor]

    def _bytes():
        return t0 * full_ax1 * t_other * itemsize

    if _bytes() > budget:
        cap0 = max(gran_ax0, budget // max(1, full_ax1 * t_other * itemsize))
        t0 = _pick_tile(x.shape[ax0], gran_ax0, cap0)
    if _bytes() > budget:
        cap_o = max(gran_other, budget // max(1, t0 * full_ax1 * itemsize))
        t_other = _pick_tile(x.shape[other_minor], gran_other, cap_o)
    # TODO(synk): if x.shape[ax1] alone is so large that even minimal tiles of
    # ax0 / other_minor exceed the budget, ax1 itself would need tiling too.

    grid_majors = [a for a in range(nd - 2) if a != ax0]
    n0 = pl.cdiv(x.shape[ax0], t0)
    n_other = pl.cdiv(x.shape[other_minor], t_other)

    # Innermost grid axis advances the OUTPUT's last (lane) dimension.
    if ax1 == nd - 1:
        tail_grid = (n_other, n0)

        def tail_split(idx):
            return idx[-1], idx[-2]       # (i0, i_other)
    else:
        tail_grid = (n0, n_other)

        def tail_split(idx):
            return idx[-2], idx[-1]

    grid = tuple(x.shape[a] for a in grid_majors) + tail_grid
    nmaj = len(grid_majors)

    def _block(shape_of_ax0, shape_of_ax1):
        blk = [0] * nd
        for a in range(nd):
            if a in grid_majors:
                blk[a] = 1
            elif a == ax0:
                blk[a] = shape_of_ax0
            elif a == ax1:
                blk[a] = shape_of_ax1
            else:                        # other_minor
                blk[a] = t_other
        return tuple(blk)

    in_block = _block(t0, full_ax1)
    out_block = _block(full_ax1, t0)     # out.shape[ax0] == x.shape[ax1]

    def in_map(*idx):
        i0, io = tail_split(idx)
        out = [0] * nd
        for g, a in enumerate(grid_majors):
            out[a] = idx[g]
        out[ax0] = i0
        out[other_minor] = io
        return tuple(out)

    def out_map(*idx):
        i0, io = tail_split(idx)
        out = [0] * nd
        for g, a in enumerate(grid_majors):
            out[a] = idx[g]
        out[ax1] = i0
        out[other_minor] = io
        return tuple(out)

    kernel = functools.partial(_transpose_kernel, ax0=ax0, ax1=ax1)
    return pl.pallas_call(
        kernel,
        out_shape=jax.ShapeDtypeStruct(out_shape, x.dtype),
        grid=grid,
        in_specs=[pl.BlockSpec(in_block, in_map)],
        out_specs=pl.BlockSpec(out_block, out_map),
        compiler_params=pltpu.CompilerParams(
            dimension_semantics=("parallel",) * len(grid),
            vmem_limit_bytes=vmem_limit),
        cost_estimate=_cost(x),
    )(x)


# --------------------------------------------------------------------------
# Dispatcher
# --------------------------------------------------------------------------
def swapaxes_pallas(x, ax0, ax1):
    """Pallas equivalent of torch.transpose(x, ax0, ax1)."""
    nd = x.ndim
    ax0 %= nd
    ax1 %= nd
    if ax0 == ax1:
        return x                         # identity (view semantics, no copy)
    if ax0 > ax1:
        ax0, ax1 = ax1, ax0

    out_shape = list(x.shape)
    out_shape[ax0], out_shape[ax1] = out_shape[ax1], out_shape[ax0]
    out_shape = tuple(out_shape)

    vmem_limit, block_budget = _hw_config()

    if ax1 <= nd - 3:
        # Both axes major: pure HBM->HBM DMA relayout, no VMEM staging.
        return _swap_major_pair(x, out_shape, ax0, ax1, vmem_limit)

    # The swap touches a minor dim. If the result's lane dim is narrow the
    # kernel would be masked-store bound (vst.msk at <128/128 lanes); let XLA
    # fuse the transpose into the consumer instead of launching a kernel.
    if out_shape[-1] < 128:
        return jnp.swapaxes(x, ax0, ax1)

    if ax0 == nd - 2:                                    # ax1 == nd - 1
        return _swap_minor_pair(x, out_shape, block_budget, vmem_limit)
    return _swap_mixed_pair(x, out_shape, ax0, ax1, block_budget, vmem_limit)


class SwapaxesPallas:
    """Mirror of the PyTorch Swapaxes nn.Module (no parameters)."""

    def __init__(self, *axes):
        assert len(axes) == 2, "Swapaxes expects exactly two axis indices"
        self.axes = axes

    def __call__(self, x):
        return swapaxes_pallas(x, *self.axes)


if __name__ == "__main__":
    key = jax.random.PRNGKey(0)
    ks = jax.random.split(key, 6)

    x = jax.random.normal(ks[0], (2, 4, 16, 128), dtype=jnp.float32)     # A + fallback
    x2 = jax.random.normal(ks[1], (2, 1024, 256), dtype=jnp.float32)     # B1 minor pair
    x3 = jax.random.normal(ks[2], (2, 256, 8, 128), dtype=jnp.float32)   # B2, ax1 == nd-1
    x4 = jax.random.normal(ks[3], (2, 256, 16, 128), dtype=jnp.float32)  # B2, ax1 == nd-2
    x5 = jax.random.normal(ks[4], (8, 8, 256, 128), dtype=jnp.float32)   # B1 + leading fold
    x6 = jax.random.normal(ks[5], (2, 256, 384), dtype=jnp.bfloat16)     # B1 bf16

    tests = [
        ((0, 1), x),      # Path A: major-pair swap -> direct HBM->HBM DMA ring
        ((-2, -1), x2),   # Path B1: tiled minor-pair transpose
        ((1, 3), x3),     # Path B2: major <-> lane swap (ax0 tiled as needed)
        ((1, 2), x4),     # Path B2: major <-> sublane swap
        ((2, 3), x5),     # Path B1 with a leading dim folded into the block
        ((1, 2), x6),     # Path B1, bf16
        ((2, 3), x),      # narrow-lane output (<128) -> jnp.swapaxes fallback
        ((1, 1), x),      # degenerate identity
    ]
    for axes, inp in tests:
        y = jax.block_until_ready(SwapaxesPallas(*axes)(inp))
        ref = jnp.swapaxes(inp, *axes)
        assert y.shape == ref.shape, (axes, inp.shape, y.shape, ref.shape)
        assert y.dtype == ref.dtype, (axes, y.dtype, ref.dtype)
        assert bool(jnp.array_equal(y, ref)), (
            f"mismatch vs jnp.swapaxes for axes={axes}, shape={inp.shape}")

    print("KERNEL_OK")
</pallas_src>

<mosaic_0001>
module attributes {stable_mosaic.version = 11 : i64} {
  func.func @_hbm_swap_dma_kernel(%arg0: i32, %arg1: i32, %arg2: memref<2x4x16x128xf32, #tpu.memory_space<any>>, %arg3: memref<4x2x16x128xf32, #tpu.memory_space<any>>, %arg4: memref<4x!tpu.dma_semaphore, #tpu.memory_space<semaphore_mem>>) attributes {dimension_semantics = [#tpu.dimension_semantics<arbitrary>, #tpu.dimension_semantics<arbitrary>], iteration_bounds = array<i64: 4, 2>, scalar_prefetch = 0 : i64, scratch_operands = 1 : i64, tpu.core_type = #tpu.core_type<tc>, window_params = [{}, {}]} {
    %c2_i32 = arith.constant 2 : i32
    %0 = arith.muli %arg0, %c2_i32 : i32
    %1 = arith.addi %0, %arg1 : i32
    %c4_i32 = arith.constant 4 : i32
    %c0_i32 = arith.constant 0 : i32
    %2 = arith.cmpi eq, %c4_i32, %c0_i32 : i32
    %c1_i32 = arith.constant 1 : i32
    %3 = arith.select %2, %c1_i32, %c4_i32 : i32
    %4 = arith.remsi %1, %3 : i32
    %c0_i32_0 = arith.constant 0 : i32
    %5 = arith.cmpi ne, %4, %c0_i32_0 : i32
    %c0_i32_1 = arith.constant 0 : i32
    %6 = arith.cmpi slt, %4, %c0_i32_1 : i32
    %c0_i32_2 = arith.constant 0 : i32
    %7 = arith.cmpi slt, %3, %c0_i32_2 : i32
    %8 = arith.xori %6, %7 : i1
    %9 = arith.andi %8, %5 : i1
    %10 = arith.addi %4, %3 : i32
    %11 = arith.select %9, %10, %4 : i32
    %c4_i32_3 = arith.constant 4 : i32
    %12 = arith.cmpi sge, %1, %c4_i32_3 : i32
    %13 = arith.extui %12 : i1 to i32
    %c0_i32_4 = arith.constant 0 : i32
    %14 = arith.cmpi ne, %13, %c0_i32_4 : i32
    scf.if %14 {
      %c0_i32_10 = arith.constant 0 : i32
      %c0_i32_11 = arith.constant 0 : i32
      %24 = tpu.memref_slice %arg2[%arg1, %arg0, %c0_i32_10, %c0_i32_11] : memref<2x4x16x128xf32, #tpu.memory_space<any>> -> memref<1x1x16x128xf32, #tpu.memory_space<any>>
      %25 = tpu.memref_squeeze %24 : memref<1x1x16x128xf32, #tpu.memory_space<any>> -> memref<16x128xf32, #tpu.memory_space<any>>
      %c0_i32_12 = arith.constant 0 : i32
      %c0_i32_13 = arith.constant 0 : i32
      %26 = tpu.memref_slice %arg3[%arg0, %arg1, %c0_i32_12, %c0_i32_13] : memref<4x2x16x128xf32, #tpu.memory_space<any>> -> memref<1x1x16x128xf32, #tpu.memory_space<any>>
      %27 = tpu.memref_squeeze %26 : memref<1x1x16x128xf32, #tpu.memory_space<any>> -> memref<16x128xf32, #tpu.memory_space<any>>
      %28 = tpu.memref_slice %arg4[%11] : memref<4x!tpu.dma_semaphore, #tpu.memory_space<semaphore_mem>> -> memref<1x!tpu.dma_semaphore, #tpu.memory_space<semaphore_mem>>
      %29 = tpu.memref_squeeze %28 : memref<1x!tpu.dma_semaphore, #tpu.memory_space<semaphore_mem>> -> memref<!tpu.dma_semaphore, #tpu.memory_space<semaphore_mem>>
      tpu.wait_dma2 semaphore(%29 : memref<!tpu.dma_semaphore, #tpu.memory_space<semaphore_mem>>) src(%25 : memref<16x128xf32, #tpu.memory_space<any>>) dst(%27 : memref<16x128xf32, #tpu.memory_space<any>>)
    } else {
    }
    %c0_i32_5 = arith.constant 0 : i32
    %c0_i32_6 = arith.constant 0 : i32
    %15 = tpu.memref_slice %arg2[%arg1, %arg0, %c0_i32_5, %c0_i32_6] : memref<2x4x16x128xf32, #tpu.memory_space<any>> -> memref<1x1x16x128xf32, #tpu.memory_space<any>>
    %16 = tpu.memref_squeeze %15 : memref<1x1x16x128xf32, #tpu.memory_space<any>> -> memref<16x128xf32, #tpu.memory_space<any>>
    %c0_i32_7 = arith.constant 0 : i32
    %c0_i32_8 = arith.constant 0 : i32
    %17 = tpu.memref_slice %arg3[%arg0, %arg1, %c0_i32_7, %c0_i32_8] : memref<4x2x16x128xf32, #tpu.memory_space<any>> -> memref<1x1x16x128xf32, #tpu.memory_space<any>>
    %18 = tpu.memref_squeeze %17 : memref<1x1x16x128xf32, #tpu.memory_space<any>> -> memref<16x128xf32, #tpu.memory_space<any>>
    %19 = tpu.memref_slice %arg4[%11] : memref<4x!tpu.dma_semaphore, #tpu.memory_space<semaphore_mem>> -> memref<1x!tpu.dma_semaphore, #tpu.memory_space<semaphore_mem>>
    %20 = tpu.memref_squeeze %19 : memref<1x!tpu.dma_semaphore, #tpu.memory_space<semaphore_mem>> -> memref<!tpu.dma_semaphore, #tpu.memory_space<semaphore_mem>>
    tpu.enqueue_dma source(%16 : memref<16x128xf32, #tpu.memory_space<any>>) target(%18 : memref<16x128xf32, #tpu.memory_space<any>>) target_semaphore(%20 : memref<!tpu.dma_semaphore, #tpu.memory_space<semaphore_mem>>)
    %c7_i32 = arith.constant 7 : i32
    %21 = arith.cmpi eq, %1, %c7_i32 : i32
    %22 = arith.extui %21 : i1 to i32
    %c0_i32_9 = arith.constant 0 : i32
    %23 = arith.cmpi ne, %22, %c0_i32_9 : i32
    scf.if %23 {
      %c0_i32_10 = arith.constant 0 : i32
      %c0_i32_11 = arith.constant 0 : i32
      %c0_i32_12 = arith.constant 0 : i32
      %24 = tpu.memref_slice %arg2[%arg1, %arg0, %c0_i32_11, %c0_i32_12] : memref<2x4x16x128xf32, #tpu.memory_space<any>> -> memref<1x1x16x128xf32, #tpu.memory_space<any>>
      %25 = tpu.memref_squeeze %24 : memref<1x1x16x128xf32, #tpu.memory_space<any>> -> memref<16x128xf32, #tpu.memory_space<any>>
      %c0_i32_13 = arith.constant 0 : i32
      %c0_i32_14 = arith.constant 0 : i32
      %26 = tpu.memref_slice %arg3[%arg0, %arg1, %c0_i32_13, %c0_i32_14] : memref<4x2x16x128xf32, #tpu.memory_space<any>> -> memref<1x1x16x128xf32, #tpu.memory_space<any>>
      %27 = tpu.memref_squeeze %26 : memref<1x1x16x128xf32, #tpu.memory_space<any>> -> memref<16x128xf32, #tpu.memory_space<any>>
      %28 = tpu.memref_slice %arg4[%c0_i32_10] : memref<4x!tpu.dma_semaphore, #tpu.memory_space<semaphore_mem>> -> memref<1x!tpu.dma_semaphore, #tpu.memory_space<semaphore_mem>>
      %29 = tpu.memref_squeeze %28 : memref<1x!tpu.dma_semaphore, #tpu.memory_space<semaphore_mem>> -> memref<!tpu.dma_semaphore, #tpu.memory_space<semaphore_mem>>
      tpu.wait_dma2 semaphore(%29 : memref<!tpu.dma_semaphore, #tpu.memory_space<semaphore_mem>>) src(%25 : memref<16x128xf32, #tpu.memory_space<any>>) dst(%27 : memref<16x128xf32, #tpu.memory_space<any>>)
      %c1_i32_15 = arith.constant 1 : i32
      %c0_i32_16 = arith.constant 0 : i32
      %c0_i32_17 = arith.constant 0 : i32
      %30 = tpu.memref_slice %arg2[%arg1, %arg0, %c0_i32_16, %c0_i32_17] : memref<2x4x16x128xf32, #tpu.memory_space<any>> -> memref<1x1x16x128xf32, #tpu.memory_space<any>>
      %31 = tpu.memref_squeeze %30 : memref<1x1x16x128xf32, #tpu.memory_space<any>> -> memref<16x128xf32, #tpu.memory_space<any>>
      %c0_i32_18 = arith.constant 0 : i32
      %c0_i32_19 = arith.constant 0 : i32
      %32 = tpu.memref_slice %arg3[%arg0, %arg1, %c0_i32_18, %c0_i32_19] : memref<4x2x16x128xf32, #tpu.memory_space<any>> -> memref<1x1x16x128xf32, #tpu.memory_space<any>>
      %33 = tpu.memref_squeeze %32 : memref<1x1x16x128xf32, #tpu.memory_space<any>> -> memref<16x128xf32, #tpu.memory_space<any>>
      %34 = tpu.memref_slice %arg4[%c1_i32_15] : memref<4x!tpu.dma_semaphore, #tpu.memory_space<semaphore_mem>> -> memref<1x!tpu.dma_semaphore, #tpu.memory_space<semaphore_mem>>
      %35 = tpu.memref_squeeze %34 : memref<1x!tpu.dma_semaphore, #tpu.memory_space<semaphore_mem>> -> memref<!tpu.dma_semaphore, #tpu.memory_space<semaphore_mem>>
      tpu.wait_dma2 semaphore(%35 : memref<!tpu.dma_semaphore, #tpu.memory_space<semaphore_mem>>) src(%31 : memref<16x128xf32, #tpu.memory_space<any>>) dst(%33 : memref<16x128xf32, #tpu.memory_space<any>>)
      %c2_i32_20 = arith.constant 2 : i32
      %c0_i32_21 = arith.constant 0 : i32
      %c0_i32_22 = arith.constant 0 : i32
      %36 = tpu.memref_slice %arg2[%arg1, %arg0, %c0_i32_21, %c0_i32_22] : memref<2x4x16x128xf32, #tpu.memory_space<any>> -> memref<1x1x16x128xf32, #tpu.memory_space<any>>
      %37 = tpu.memref_squeeze %36 : memref<1x1x16x128xf32, #tpu.memory_space<any>> -> memref<16x128xf32, #tpu.memory_space<any>>
      %c0_i32_23 = arith.constant 0 : i32
      %c0_i32_24 = arith.constant 0 : i32
      %38 = tpu.memref_slice %arg3[%arg0, %arg1, %c0_i32_23, %c0_i32_24] : memref<4x2x16x128xf32, #tpu.memory_space<any>> -> memref<1x1x16x128xf32, #tpu.memory_space<any>>
      %39 = tpu.memref_squeeze %38 : memref<1x1x16x128xf32, #tpu.memory_space<any>> -> memref<16x128xf32, #tpu.memory_space<any>>
      %40 = tpu.memref_slice %arg4[%c2_i32_20] : memref<4x!tpu.dma_semaphore, #tpu.memory_space<semaphore_mem>> -> memref<1x!tpu.dma_semaphore, #tpu.memory_space<semaphore_mem>>
      %41 = tpu.memref_squeeze %40 : memref<1x!tpu.dma_semaphore, #tpu.memory_space<semaphore_mem>> -> memref<!tpu.dma_semaphore, #tpu.memory_space<semaphore_mem>>
      tpu.wait_dma2 semaphore(%41 : memref<!tpu.dma_semaphore, #tpu.memory_space<semaphore_mem>>) src(%37 : memref<16x128xf32, #tpu.memory_space<any>>) dst(%39 : memref<16x128xf32, #tpu.memory_space<any>>)
      %c3_i32 = arith.constant 3 : i32
      %c0_i32_25 = arith.constant 0 : i32
      %c0_i32_26 = arith.constant 0 : i32
      %42 = tpu.memref_slice %arg2[%arg1, %arg0, %c0_i32_25, %c0_i32_26] : memref<2x4x16x128xf32, #tpu.memory_space<any>> -> memref<1x1x16x128xf32, #tpu.memory_space<any>>
      %43 = tpu.memref_squeeze %42 : memref<1x1x16x128xf32, #tpu.memory_space<any>> -> memref<16x128xf32, #tpu.memory_space<any>>
      %c0_i32_27 = arith.constant 0 : i32
      %c0_i32_28 = arith.constant 0 : i32
      %44 = tpu.memref_slice %arg3[%arg0, %arg1, %c0_i32_27, %c0_i32_28] : memref<4x2x16x128xf32, #tpu.memory_space<any>> -> memref<1x1x16x128xf32, #tpu.memory_space<any>>
      %45 = tpu.memref_squeeze %44 : memref<1x1x16x128xf32, #tpu.memory_space<any>> -> memref<16x128xf32, #tpu.memory_space<any>>
      %46 = tpu.memref_slice %arg4[%c3_i32] : memref<4x!tpu.dma_semaphore, #tpu.memory_space<semaphore_mem>> -> memref<1x!tpu.dma_semaphore, #tpu.memory_space<semaphore_mem>>
      %47 = tpu.memref_squeeze %46 : memref<1x!tpu.dma_semaphore, #tpu.memory_space<semaphore_mem>> -> memref<!tpu.dma_semaphore, #tpu.memory_space<semaphore_mem>>
      tpu.wait_dma2 semaphore(%47 : memref<!tpu.dma_semaphore, #tpu.memory_space<semaphore_mem>>) src(%43 : memref<16x128xf32, #tpu.memory_space<any>>) dst(%45 : memref<16x128xf32, #tpu.memory_space<any>>)
    } else {
    }
    return
  }
}

</mosaic_0001>

<bundles_post_ra>
// kernel: tpu_custom_call.1
= control target key start
LH: loop header
LB: loop body
LE: loop exit
PB: predicated region body
PF: predicated region fallthrough
CT: control target
= control target key end

     0   :  { %s234_s6 = smov 0   ;;  %s236_s7 = smov 0   ;;  %s283_s0 = inlined_call_operand.hbm [shape: f32[2,4,16,128], index: 0, kind: input, shape index: {}]   ;;  %s284_s1 = inlined_call_operand.hbm [shape: f32[4,2,16,128], index: 1, kind: output, shape index: {}]  }
   0x1   :  { %s238_s8 = smov 0  }
   0x2 LB: > { %s14_s9 = sadd.s32 1, %s212_s6  ;;  %s17_s10 = sadd.s32 1, %s216_s7  ;;  %s220_s8 = sphi %s238_s8, %s11_s8   ;;  %s216_s7 = sphi %s236_s7, %s286_s7   ;;  %s212_s6 = sphi %s234_s6, %s285_s6  }
   0x3   : > { %p15_p0 = scmp.ge.s32.totalorder %s14_s9, 2  ;;  %s127_s11 = sshll.u32 %s216_s7, 1 }
   0x4   : > { %s253_s12 = sadd.s32 %s212_s6, %s127_s11 }
   0x5   : > { %s288_s9 = smov (%p15_p0, %s14_s9), 0  ;;  %s290_s10 = smov (!%p15_p0, %s17_s10), %s216_s7 }
   0x6   : > { %s24_s13 = ssub.s32 0, %s253_s12  ;;  %p19_p1 = scmp.ge.s32.totalorder %s290_s10, 4 }
   0x7   : > { %s128_s14 = smin.u32 %s24_s13, %s253_s12  ;;  %p150_p2 = scmp.ge.s32.totalorder %s253_s12, 4 }
   0x8   : > { %s26_s15 = sand.u32 3, %s128_s14   ;;  %s292_s10 = smov (%p19_p1, %s290_s10), 0 }
   0x9   : > { %p130_p3 = scmp.lt.s32.totalorder %s26_s15, 0  ;;  %s33_s16 = sadd.s32 4, %s26_s15 }
   0xb   : > { %s294_s16 = smov (!%p130_p3, %s33_s16), %s26_s15 }
   0xc   : > { %s39_s17 = scalar_lea.sflag [#allocation2], %s294_s16 }
   0xd   : > { %191 = dma.done.wait (%p150_p2), %s39_s17, 256 }
   0xe   : > { %193 = vsyncadd (%p150_p2), %s39_s17, 4294967040  ;;  %s132_s18 = sshll.u32 %s216_s7, 4  ;;  %s133_s19 = sshll.u32 %s212_s6, 6 }
   0xf   : > { %s45_s20 = sadd.s32 %s133_s19, %s132_s18  ;;  %s135_s21 = sshll.u32 %s212_s6, 4 }
  0x10   : > { %s134_s22 = sshll.u32 %s45_s20, 4  ;;  %s136_s23 = sshll.u32 %s216_s7, 5 }
  0x11   : > { %s47_s26 = scalar_lea.hbm %s283_s0, %s134_s22  ;;  %s50_s27 = sadd.s32 %s136_s23, %s135_s21 }
  0x12   : > { %s137_s28 = sshll.u32 %s50_s27, 4  ;;  %s222_s3 = smov 131072  }
  0x13   : > { %s52_s2 = scalar_lea.hbm %s284_s1, %s137_s28  ;;  %s223_s4 = smov 0  }
  0x14   : > { %60 = dma.general %s47_s26, 256, %s52_s2, %s39_s17, %s222_s3, [#allocation4], %s223_s4, 0  }
  0x15   : > { %p151_p4 = scmp.eq.s32.totalorder %s253_s12, 7 }
  0x17   : > { %195 = dma.done.wait (%p151_p4), [#allocation2], 256 }
  0x18   : > { %197 = vsyncadd (%p151_p4), [#allocation2], 4294967040 }
  0x19   : > { %199 = dma.done.wait (%p151_p4), [#allocation2 + $0x1], 256 }
  0x1a   : > { %201 = vsyncadd (%p151_p4), [#allocation2 + $0x1], 4294967040 }
  0x1b   : > { %203 = dma.done.wait (%p151_p4), [#allocation2 + $0x2], 256 }
  0x1c   : > { %205 = vsyncadd (%p151_p4), [#allocation2 + $0x2], 4294967040 }
  0x1d   : > { %207 = dma.done.wait (%p151_p4), [#allocation2 + $0x3], 256 }
  0x1e   : > { %209 = vsyncadd (%p151_p4), [#allocation2 + $0x3], 4294967040  ;;  %s11_s8 = sadd.s32 1, %s220_s8   ;;  %s285_s6 = smov %s288_s9 }
  0x1f   : > { %p8_p5 = scmp.ge.s32.totalorder %s11_s8, 8   ;;  %s286_s7 = smov %s292_s10 }
  0x21   :  { %10 = sbr.rel (!%p8_p5) target bundleno = 2 (0x2), region = 37 }
  0x26   :  { %77 = vsyncmov [#allocation2] }
  0x29   :  { %s78_s5 = vpop.sfrf %77 }
  0x2a   :  { %p139_p6 = scmp.ne.s32.totalorder %s78_s5, 0 }
  0x2c   :  { %82 = shalt.err (%p139_p6)  }
  0x2d   :  { %84 = vsyncmov [#allocation2 + $0x1] }
  0x30   :  { %s85_s11 = vpop.sfrf %84 }
  0x31   :  { %p140_p7 = scmp.ne.s32.totalorder %s85_s11, 0 }
  0x33   :  { %89 = shalt.err (%p140_p7)  }
  0x34   :  { %91 = vsyncmov [#allocation2 + $0x2] }
  0x37   :  { %s92_s12 = vpop.sfrf %91 }
  0x38   :  { %p141_p8 = scmp.ne.s32.totalorder %s92_s12, 0 }
  0x3a   :  { %96 = shalt.err (%p141_p8)  }
  0x3b   :  { %98 = vsyncmov [#allocation2 + $0x3] }
  0x3e   :  { %s99_s13 = vpop.sfrf %98 }
  0x3f   :  { %p142_p9 = scmp.ne.s32.totalorder %s99_s13, 0 }
  0x41   :  { %103 = shalt.err (%p142_p9)  }

</bundles_post_ra>
